<compile_context>
chip_gen: v5e
topology: v5e:2x2
jax: 0.10.0
libtpu: 0.0.40
codegen_flags: <defaults>
</compile_context>

<pallas_src>
import functools

import jax
import jax.numpy as jnp
from jax.experimental import pallas as pl
from jax.experimental.pallas import tpu as pltpu


def _qnetwork_kernel(x_ref, w1_ref, b1_ref, w2_ref, b2_ref, w3_ref, b3_ref,
                     out_ref, *, n_out):
    """Fused 3-layer MLP, all-f32 (MXU matmuls, VPU bias+ReLU)."""
    x = x_ref[...]
    h1 = jnp.dot(x, w1_ref[...], preferred_element_type=jnp.float32)
    h1 = jnp.maximum(h1 + b1_ref[...], 0.0)
    h2 = jnp.dot(h1, w2_ref[...], preferred_element_type=jnp.float32)
    h2 = jnp.maximum(h2 + b2_ref[...], 0.0)
    # W3 is lane-padded to a 128-wide slab (MXU-friendly matmul shape); only
    # the first n_out columns are real, so store just those -> the HBM output
    # write is (tb, n_out) instead of (tb, 128).
    h3 = jnp.dot(h2, w3_ref[...], preferred_element_type=jnp.float32)
    out_ref[...] = h3[:, :n_out] + b3_ref[...]


def prepare_params(params):
    """One-time preprocessing (hoisted out of the forward path).

    Lane-pads W3 to a 128-wide slab; everything stays f32.  Call this once at
    init (and after each optimizer update), not per forward pass.
    """
    w1, b1, w2, b2, w3, b3 = params
    fc2_units, action_size = w3.shape
    n_pad = max(128, ((action_size + 127) // 128) * 128)
    w3p = jnp.zeros((fc2_units, n_pad), jnp.float32).at[:, :action_size].set(
        w3.astype(jnp.float32))
    return (jnp.asarray(w1, jnp.float32), jnp.asarray(b1, jnp.float32),
            jnp.asarray(w2, jnp.float32), jnp.asarray(b2, jnp.float32),
            w3p, jnp.asarray(b3, jnp.float32))


def qnetwork_forward(x, prepared, tb=1024):
    """prepared = prepare_params(params); x is [batch, state_size] f32."""
    w1, b1, w2, b2, w3p, b3 = prepared
    batch, state_size = x.shape
    fc1_units = w1.shape[1]
    fc2_units = w2.shape[1]
    action_size = b3.shape[1]
    n_pad = w3p.shape[1]

    # --- batch tile: multiple of 8 sublanes, >= 2 grid steps when possible ---
    batch8 = max(8, ((batch + 7) // 8) * 8)
    tb = int(tb)
    tb = min(tb, batch8)
    if batch8 >= 16:
        # Keep at least 2 grid steps so the "parallel" batch axis can shard
        # across v7x's two TensorCores (no-op on v5e/v6e).
        tb = min(tb, max(8, (batch8 // 2) // 8 * 8))
    tb = max(8, (tb // 8) * 8)
    grid = (pl.cdiv(batch, tb),)  # ragged last tile handled by Pallas clipping

    def const_spec(a):
        # Full-array block with a grid-independent index -> weights and biases
        # are DMA'd once and stay VMEM-resident across all batch tiles.
        nd = a.ndim
        return pl.BlockSpec(a.shape, lambda i, nd=nd: (0,) * nd)

    flops = 2 * batch * (state_size * fc1_units
                         + fc1_units * fc2_units
                         + fc2_units * n_pad)
    bytes_accessed = (batch * state_size * 4               # x in
                      + batch * action_size * 4            # out
                      + (w1.size + w2.size + w3p.size
                         + b1.size + b2.size + b3.size) * 4)

    kernel = functools.partial(_qnetwork_kernel, n_out=action_size)

    return pl.pallas_call(
        kernel,
        out_shape=jax.ShapeDtypeStruct((batch, action_size), jnp.float32),
        grid=grid,
        in_specs=[
            pl.BlockSpec((tb, state_size), lambda i: (i, 0)),  # stream x tiles
            const_spec(w1), const_spec(b1),
            const_spec(w2), const_spec(b2),
            const_spec(w3p), const_spec(b3),
        ],
        out_specs=pl.BlockSpec((tb, action_size), lambda i: (i, 0)),
        compiler_params=pltpu.CompilerParams(
            dimension_semantics=("parallel",)),
        cost_estimate=pl.CostEstimate(
            flops=flops, transcendentals=0, bytes_accessed=bytes_accessed),
    )(x, w1, b1, w2, b2, w3p, b3)


def init_qnetwork_params(key, state_size, action_size, fc1_units=64,
                         fc2_units=64):
    """Deterministic init matching nn.Linear's default U(-1/sqrt(in), 1/sqrt(in))."""
    dims = [(state_size, fc1_units), (fc1_units, fc2_units),
            (fc2_units, action_size)]
    params = []
    for (fan_in, fan_out) in dims:
        key, kw, kb = jax.random.split(key, 3)
        bound = 1.0 / jnp.sqrt(jnp.float32(fan_in))
        # Stored as [in, out] (transpose of PyTorch's [out, in] layout).
        w = jax.random.uniform(kw, (fan_in, fan_out), jnp.float32,
                               minval=-bound, maxval=bound)
        b = jax.random.uniform(kb, (1, fan_out), jnp.float32,
                               minval=-bound, maxval=bound)
        params += [w, b]
    return tuple(params)


if __name__ == "__main__":
    key = jax.random.PRNGKey(0)
    state_size = 16
    action_size = 4
    batch = 8

    key, pkey, xkey = jax.random.split(key, 3)
    params = init_qnetwork_params(pkey, state_size, action_size)
    prepared = prepare_params(params)   # one-time, outside the forward path
    x = jax.random.normal(xkey, (batch, state_size), jnp.float32)

    out = qnetwork_forward(x, prepared)
    jax.block_until_ready(out)
    assert out.shape == (batch, action_size)

    # Full-f32 reference matching the PyTorch module semantics.
    w1, b1, w2, b2, w3, b3 = params
    hp = jax.lax.Precision.HIGHEST
    ref = jnp.maximum(jnp.dot(x, w1, precision=hp) + b1, 0.0)
    ref = jnp.maximum(jnp.dot(ref, w2, precision=hp) + b2, 0.0)
    ref = jnp.dot(ref, w3, precision=hp) + b3
    assert jnp.allclose(out, ref, atol=1e-3, rtol=1e-3), \
        "mismatch vs f32 reference"

    print("KERNEL_OK")
</pallas_src>

<mosaic_0001>
module attributes {stable_mosaic.version = 11 : i64} {
  func.func @_qnetwork_kernel(%arg0: i32, %arg1: memref<8x16xf32, #tpu.memory_space<vmem>>, %arg2: memref<16x64xf32, #tpu.memory_space<vmem>>, %arg3: memref<1x64xf32, #tpu.memory_space<vmem>>, %arg4: memref<64x64xf32, #tpu.memory_space<vmem>>, %arg5: memref<1x64xf32, #tpu.memory_space<vmem>>, %arg6: memref<64x128xf32, #tpu.memory_space<vmem>>, %arg7: memref<1x4xf32, #tpu.memory_space<vmem>>, %arg8: memref<8x4xf32, #tpu.memory_space<vmem>>) attributes {dimension_semantics = [#tpu.dimension_semantics<parallel>], iteration_bounds = array<i64: 1>, scalar_prefetch = 0 : i64, scratch_operands = 0 : i64, tpu.core_type = #tpu.core_type<tc>, window_params = [{transform_indices = @transform_0, window_bounds = array<i64: 8, 16>}, {pipeline_mode = #tpu.pipeline_mode<synchronous>, transform_indices = @transform_1, window_bounds = array<i64: 16, 64>}, {pipeline_mode = #tpu.pipeline_mode<synchronous>, transform_indices = @transform_2, window_bounds = array<i64: 1, 64>}, {pipeline_mode = #tpu.pipeline_mode<synchronous>, transform_indices = @transform_3, window_bounds = array<i64: 64, 64>}, {pipeline_mode = #tpu.pipeline_mode<synchronous>, transform_indices = @transform_4, window_bounds = array<i64: 1, 64>}, {pipeline_mode = #tpu.pipeline_mode<synchronous>, transform_indices = @transform_5, window_bounds = array<i64: 64, 128>}, {pipeline_mode = #tpu.pipeline_mode<synchronous>, transform_indices = @transform_6, window_bounds = array<i64: 1, 4>}, {transform_indices = @transform_7, window_bounds = array<i64: 8, 4>}]} {
    %c0 = arith.constant 0 : index
    %c0_0 = arith.constant 0 : index
    %0 = vector.load %arg1[%c0, %c0_0] : memref<8x16xf32, #tpu.memory_space<vmem>>, vector<8x16xf32>
    %c0_1 = arith.constant 0 : index
    %c0_2 = arith.constant 0 : index
    %1 = vector.load %arg2[%c0_1, %c0_2] : memref<16x64xf32, #tpu.memory_space<vmem>>, vector<16x64xf32>
    %cst = arith.constant dense<0.000000e+00> : vector<8x64xf32>
    %2 = tpu.matmul %0, %1, %cst {dimension_numbers = #tpu.dot_dimension_numbers<[1], [0], [0], [1], [0, 0, 1, 1], [], []>} : vector<8x16xf32>, vector<16x64xf32>, vector<8x64xf32> -> vector<8x64xf32>
    %c0_3 = arith.constant 0 : index
    %c0_4 = arith.constant 0 : index
    %3 = vector.load %arg3[%c0_3, %c0_4] : memref<1x64xf32, #tpu.memory_space<vmem>>, vector<1x64xf32>
    %4 = vector.broadcast %3 : vector<1x64xf32> to vector<8x64xf32>
    %5 = arith.addf %2, %4 : vector<8x64xf32>
    %cst_5 = arith.constant 0.000000e+00 : f32
    %6 = vector.broadcast %cst_5 : f32 to vector<8x64xf32>
    %7 = arith.maximumf %5, %6 : vector<8x64xf32>
    %c0_6 = arith.constant 0 : index
    %c0_7 = arith.constant 0 : index
    %8 = vector.load %arg4[%c0_6, %c0_7] : memref<64x64xf32, #tpu.memory_space<vmem>>, vector<64x64xf32>
    %cst_8 = arith.constant dense<0.000000e+00> : vector<8x64xf32>
    %9 = tpu.matmul %7, %8, %cst_8 {dimension_numbers = #tpu.dot_dimension_numbers<[1], [0], [0], [1], [0, 0, 1, 1], [], []>} : vector<8x64xf32>, vector<64x64xf32>, vector<8x64xf32> -> vector<8x64xf32>
    %c0_9 = arith.constant 0 : index
    %c0_10 = arith.constant 0 : index
    %10 = vector.load %arg5[%c0_9, %c0_10] : memref<1x64xf32, #tpu.memory_space<vmem>>, vector<1x64xf32>
    %11 = vector.broadcast %10 : vector<1x64xf32> to vector<8x64xf32>
    %12 = arith.addf %9, %11 : vector<8x64xf32>
    %cst_11 = arith.constant 0.000000e+00 : f32
    %13 = vector.broadcast %cst_11 : f32 to vector<8x64xf32>
    %14 = arith.maximumf %12, %13 : vector<8x64xf32>
    %c0_12 = arith.constant 0 : index
    %c0_13 = arith.constant 0 : index
    %15 = vector.load %arg6[%c0_12, %c0_13] : memref<64x128xf32, #tpu.memory_space<vmem>>, vector<64x128xf32>
    %cst_14 = arith.constant dense<0.000000e+00> : vector<8x128xf32>
    %16 = tpu.matmul %14, %15, %cst_14 {dimension_numbers = #tpu.dot_dimension_numbers<[1], [0], [0], [1], [0, 0, 1, 1], [], []>} : vector<8x64xf32>, vector<64x128xf32>, vector<8x128xf32> -> vector<8x128xf32>
    %17 = vector.extract_strided_slice %16 {offsets = [0, 0], sizes = [8, 4], strides = [1, 1]} : vector<8x128xf32> to vector<8x4xf32>
    %c0_15 = arith.constant 0 : index
    %c0_16 = arith.constant 0 : index
    %18 = vector.load %arg7[%c0_15, %c0_16] : memref<1x4xf32, #tpu.memory_space<vmem>>, vector<1x4xf32>
    %19 = vector.broadcast %18 : vector<1x4xf32> to vector<8x4xf32>
    %20 = arith.addf %17, %19 : vector<8x4xf32>
    %c0_17 = arith.constant 0 : index
    %c0_18 = arith.constant 0 : index
    %21 = vector.load %arg8[%c0_17, %c0_18] : memref<8x4xf32, #tpu.memory_space<vmem>>, vector<8x4xf32>
    tpu.vector_store %arg8[%c0_17, %c0_18], %20 {strides = array<i32>} : memref<8x4xf32, #tpu.memory_space<vmem>>, vector<8x4xf32>,
    return
  }
  func.func @transform_0(%arg0: i32) -> (i32, i32) {
    %c0_i32 = arith.constant 0 : i32
    %c0_i32_0 = arith.constant 0 : i32
    return %arg0, %c0_i32 : i32, i32
  }
  func.func @transform_1(%arg0: i32) -> (i32, i32) {
    %c0_i32 = arith.constant 0 : i32
    %c0_i32_0 = arith.constant 0 : i32
    %c0_i32_1 = arith.constant 0 : i32
    return %c0_i32, %c0_i32_0 : i32, i32
  }
  func.func @transform_2(%arg0: i32) -> (i32, i32) {
    %c0_i32 = arith.constant 0 : i32
    %c0_i32_0 = arith.constant 0 : i32
    %c0_i32_1 = arith.constant 0 : i32
    return %c0_i32, %c0_i32_0 : i32, i32
  }
  func.func @transform_3(%arg0: i32) -> (i32, i32) {
    %c0_i32 = arith.constant 0 : i32
    %c0_i32_0 = arith.constant 0 : i32
    %c0_i32_1 = arith.constant 0 : i32
    return %c0_i32, %c0_i32_0 : i32, i32
  }
  func.func @transform_4(%arg0: i32) -> (i32, i32) {
    %c0_i32 = arith.constant 0 : i32
    %c0_i32_0 = arith.constant 0 : i32
    %c0_i32_1 = arith.constant 0 : i32
    return %c0_i32, %c0_i32_0 : i32, i32
  }
  func.func @transform_5(%arg0: i32) -> (i32, i32) {
    %c0_i32 = arith.constant 0 : i32
    %c0_i32_0 = arith.constant 0 : i32
    %c0_i32_1 = arith.constant 0 : i32
    return %c0_i32, %c0_i32_0 : i32, i32
  }
  func.func @transform_6(%arg0: i32) -> (i32, i32) {
    %c0_i32 = arith.constant 0 : i32
    %c0_i32_0 = arith.constant 0 : i32
    %c0_i32_1 = arith.constant 0 : i32
    return %c0_i32, %c0_i32_0 : i32, i32
  }
  func.func @transform_7(%arg0: i32) -> (i32, i32) {
    %c0_i32 = arith.constant 0 : i32
    %c0_i32_0 = arith.constant 0 : i32
    return %arg0, %c0_i32 : i32, i32
  }
}

</mosaic_0001>

<bundles_post_ra>
// kernel: tpu_custom_call.1
= control target key start
LH: loop header
LB: loop body
LE: loop exit
PB: predicated region body
PF: predicated region fallthrough
CT: control target
= control target key end

     0   :  { %12 = vsyncpa [#allocation3], 0  ;;  %s385_s0 = inlined_call_operand.hbm [shape: f32[8,16], index: 0, kind: input, shape index: {}]   ;;  %s386_s1 = inlined_call_operand.hbm [shape: f32[16,64], index: 1, kind: input, shape index: {}]   ;;  %s387_s2 = inlined_call_operand.vmem [shape: f32[1,64], index: 2, kind: input, shape index: {}]   ;;  %s388_s3 = inlined_call_operand.hbm [shape: f32[64,64], index: 3, kind: input, shape index: {}]   ;;  %s389_s4 = inlined_call_operand.vmem [shape: f32[1,64], index: 4, kind: input, shape index: {}]   ;;  %s390_s5 = inlined_call_operand.hbm [shape: f32[64,128], index: 5, kind: input, shape index: {}]   ;;  %s391_s6 = inlined_call_operand.vmem [shape: f32[1,4], index: 6, kind: input, shape index: {}]   ;;  %s392_s7 = inlined_call_operand.vmem [shape: f32[8,4], index: 7, kind: output, shape index: {}]  }
   0x1   :  { %13 = vsyncpa [#allocation5], 0  ;;  %s30_s26 = sshll.u32 %s386_s1, 4  ;;  %s31_s26 = int_to_ptr.hbm [resolvable:$true] %s30_s26 }
   0x2   :  { %14 = vsyncpa [#allocation8], 0  ;;  %s315_s27 = smov [#allocation4]   ;;  %s20_s8 = sshll.u32 %s385_s0, 4  ;;  %s21_s8 = int_to_ptr.hbm [resolvable:$true] %s20_s8 }
   0x3   :  { %s32_s28 = sshll.u32 %s315_s27, 4  ;;  %s316_s9 = smov 128   ;;  %s33_s28 = int_to_ptr.vmem [resolvable:$true] %s32_s28 }
   0x4   :  { %s317_s10 = smov 8   ;;  %s318_s11 = smov [#allocation2]  }
   0x5   :  { %38 = dma.hbm_to_vmem [thread:$0]  %s31_s26, 256, %s33_s28, [#allocation5], %s316_s9, %s316_s9, %s317_s10  }
   0x6   :  { %s22_s12 = sshll.u32 %s318_s11, 4  ;;  %s45_s15 = sshll.u32 %s388_s3, 4  ;;  %s23_s12 = int_to_ptr.vmem [resolvable:$true] %s22_s12  ;;  %s46_s15 = int_to_ptr.hbm [resolvable:$true] %s45_s15 }
   0x7   :  { %25 = dma.hbm_to_vmem [thread:$0]  %s21_s8, 128, %s23_s12, [#allocation3]  }
   0x8   :  { %s60_s17 = sshll.u32 %s390_s5, 4  ;;  %s319_s18 = smov [#allocation6]   ;;  %s61_s17 = int_to_ptr.hbm [resolvable:$true] %s60_s17 }
   0x9   :  { %s47_s19 = sshll.u32 %s319_s18, 4  ;;  %s320_s0 = smov [#allocation7]   ;;  %s48_s19 = int_to_ptr.vmem [resolvable:$true] %s47_s19 }
   0xa   :  { %53 = dma.hbm_to_vmem [thread:$0]  %s46_s15, 1024, %s48_s19, [#allocation5], %s316_s9, %s316_s9, %s317_s10  }
   0xb   :  { %s62_s20 = sshll.u32 %s320_s0, 4  ;;  %s63_s20 = int_to_ptr.vmem [resolvable:$true] %s62_s20 }
   0xc   :  { %68 = dma.hbm_to_vmem [thread:$0]  %s61_s17, 1024, %s63_s20, [#allocation8], %s316_s9, %s316_s9, %s317_s10  }
   0xd   :  { %309 = dma.done.wait [#allocation3], 128  }
   0xe   :  { %310 = vsyncadd [#allocation3], 4294967168 }
   0xf   :  { %311 = dma.done.wait [#allocation5], 1280  }
  0x10   :  { %312 = vsyncadd [#allocation5], 4294966016 }
  0x11   :  { %313 = dma.done.wait [#allocation8], 1024  }
  0x12   :  { %314 = vsyncadd [#allocation8], 4294966272  ;;  %v89_v0 = vld [vmem:[#allocation4 + $0x8] sm:$0xff]  ;;  %v88_v1 = vld [vmem:[#allocation4] sm:$0xff]  ;;  %vm94_vm0 = vcmask 130048   ;;  %vm131_vm1 = vcmask 523264  }
  0x13   :  { %112 = vmatpush.msra.mxu0 %v89_v0  ;;  %v87_v2 = vld [vmem:[#allocation2] sm:$0xff]  ;;  %v126_v3 = vld [vmem:[#allocation6 + $0x38] sm:$0xff]  ;;  %v125_v4 = vld [vmem:[#allocation6 + $0x30] sm:$0xff]  ;;  %vm192_vm2 = vcmask 31744  }
  0x14   :  { %143 = vmatpush.msra.mxu1 %v126_v3  ;;  %v124_v5 = vld [vmem:[#allocation6 + $0x28] sm:$0xff]  ;;  %v123_v6 = vld [vmem:[#allocation6 + $0x20] sm:$0xff]  ;;  %v122_v7 = vld [vmem:[#allocation6 + $0x18] sm:$0xff] }
  0x15   :  { %113 = vmatpush.msra.mxu0 %v88_v1  ;;  %v121_v8 = vld [vmem:[#allocation6 + $0x10] sm:$0xff]  ;;  %v120_v9 = vld [vmem:[#allocation6 + $0x8] sm:$0xff]  ;;  %v119_v10 = vld [vmem:[#allocation6] sm:$0xff] }
  0x16   :  { %201 = vmatmul.msk.f32.vlgmr.msra.gmra.mxu0 %vm94_vm0, %v87_v2  ;;  %144 = vmatpush.msra.mxu1 %v125_v4  ;;  %v163_v11 = vld [vmem:[#allocation7 + $0x38] sm:$0xff]  ;;  %v162_v12 = vld [vmem:[#allocation7 + $0x30] sm:$0xff]  ;;  %v161_v13 = vld [vmem:[#allocation7 + $0x28] sm:$0xff] }
  0x17   :  { %175 = vmatpush.msra.mxu2 %v163_v11  ;;  %v160_v14 = vld [vmem:[#allocation7 + $0x20] sm:$0xff]  ;;  %v159_v15 = vld [vmem:[#allocation7 + $0x18] sm:$0xff]  ;;  %v210_v16 = vld [vmem:[%s387_s2] ss:$0 sm:$0xff] }
  0x18   :  { %145 = vmatpush.msra.mxu1 %v124_v5  ;;  %v158_v20 = vld [vmem:[#allocation7 + $0x10] sm:$0xff]  ;;  %v157_v21 = vld [vmem:[#allocation7 + $0x8] sm:$0xff]  ;;  %v156_v22 = vld [vmem:[#allocation7] sm:$0xff] }
  0x19   :  { %176 = vmatpush.msra.mxu2 %v162_v12  ;;  %v211_v23 = vld [vmem:[%s389_s4] ss:$0 sm:$0xff] }
  0x1a   :  { %146 = vmatpush.msra.mxu1 %v123_v6  ;;  %v212_v27 = vld [vmem:[%s391_s6] ss:$0 sm:$0xff] }
  0x1b   :  { %177 = vmatpush.msra.mxu2 %v161_v13 }
  0x1c   :  { %147 = vmatpush.msra.mxu1 %v122_v7 }
  0x1d   :  { %178 = vmatpush.msra.mxu2 %v160_v14 }
  0x1e   :  { %148 = vmatpush.msra.mxu1 %v121_v8 }
  0x1f   :  { %179 = vmatpush.msra.mxu2 %v159_v15 }
  0x20   :  { %149 = vmatpush.msra.mxu1 %v120_v9 }
  0x21   :  { %180 = vmatpush.msra.mxu2 %v158_v20 }
  0x22   :  { %150 = vmatpush.msra.mxu1 %v119_v10 }
  0x23   :  { %181 = vmatpush.msra.mxu2 %v157_v21 }
  0x25   :  { %182 = vmatpush.msra.mxu2 %v156_v22 }
  0x93   :  { %v115_v17 = vpop.f32.mrf.mxu0 }
  0x94   :  { %v116_v18 = vadd.f32 %v210_v16, %v115_v17 }
  0x96   :  { %v118_v19 = vmax.f32 %v116_v18, 0.0 }
  0x98   :  { %202 = vmatmul.msk.f32.vlgmr.msra.gmra.mxu1 %vm131_vm1, %v118_v19 }
 0x115   :  { %v152_v24 = vpop.f32.mrf.mxu1 }
 0x116   :  { %v153_v25 = vadd.f32 %v211_v23, %v152_v24 }
 0x118   :  { %v155_v26 = vmax.f32 %v153_v25, 0.0 }
 0x11a   :  { %203 = vmatmul.msk.f32.vlgmr.msra.gmra.mxu2 %vm131_vm1, %v155_v26 }
 0x19d   :  { %v184_v28 = vpop.f32.mrf.mxu2 }
 0x19e   :  { %v191_v29 = vadd.f32 %v212_v27, %v184_v28 }
 0x1a0   :  { %193 = vst.msk [vmem:[%s392_s7] sm:$0xff] %vm192_vm2, %v191_v29 }
 0x1a1   :  { %198 = vsyncpa [#allocation3], 1 }
 0x1a2   :  { %199 = vsyncpa [#allocation5], 1 }
 0x1a3   :  { %200 = vsyncpa [#allocation8], 1 }

</bundles_post_ra>
